<compile_context>
chip_gen: v7x
topology: tpu7x:2x2x1
jax: 0.10.0
libtpu: 0.0.40
codegen_flags: <defaults>
</compile_context>

<pallas_src>
import jax
import jax.numpy as jnp
from jax import lax
from jax.experimental import pallas as pl
from jax.experimental.pallas import tpu as pltpu

_TR_MAX = 512            # max relation rows per tile (sublane axis, multiple of 8)
_TF_MAX = 1024           # max FFN cols per tile in the F-tiled fallback (multiple of 128)
_COMPUTE_DTYPE = jnp.bfloat16
_OUT_DTYPE = jnp.bfloat16


def _round_up(x, m):
    return (x + m - 1) // m * m


def _vmem_capacity_bytes():
    """Physical VMEM per TensorCore; conservative default if the query is unavailable."""
    try:
        return int(pltpu.get_tpu_info().vmem_capacity_bytes)
    except Exception:
        return 64 * 1024 * 1024   # v7x per-TC (smallest of v5e/v6e/v7x)


def _gather_head_tail(span_ref, hid_ref, tid_ref, ht_s):
    """In-kernel MXU gather: one_hot(ids) @ span_block -> fused (TR, 2*Hp) scratch.

    Keeps the torch.gather on-chip (no (B, R, H) head/tail copies through HBM) and lays
    head|tail out contiguously so the first Linear contracts over the full 2*Hp depth.
    """
    span = span_ref[0]                                    # (S, Hp) bf16
    tr = ht_s.shape[0]
    hp = span.shape[1]
    n_spans = span.shape[0]
    span_iota = lax.broadcasted_iota(jnp.int32, (tr, n_spans), 1)
    # One-hot built directly in bf16 (no f32 (TR, S) temps + cast).
    h_onehot = (hid_ref[0] == span_iota).astype(span.dtype)
    t_onehot = (tid_ref[0] == span_iota).astype(span.dtype)
    ht_s[:, :hp] = jnp.dot(h_onehot, span,
                           preferred_element_type=jnp.float32).astype(ht_s.dtype)
    ht_s[:, hp:] = jnp.dot(t_onehot, span,
                           preferred_element_type=jnp.float32).astype(ht_s.dtype)
    # TODO(synk): for very large num_spans (>~1-2K) a scalar-prefetched DMA row gather
    # would be preferable to the one-hot matmul; not needed at these sizes.


def _rel_ffn_resident_kernel(span_ref, hid_ref, tid_ref, w1_ref, b1_ref,
                             w2_ref, b2_ref, o_ref, ht_s):
    """Grid = (batch, rel_tiles); W1/W2/b1/b2 are VMEM-resident (constant index_maps).

    span_ref : (1, S, Hp)  bf16     hid/tid : (1, TR, 1) int32
    w1       : (2*Hp, Fp)  bf16     b1      : (1, Fp)    f32
    w2       : (Fp, Hp)    bf16     b2      : (1, Hp)    f32
    o_ref    : (1, TR, Hp) bf16     ht_s    : (TR, 2*Hp) bf16 scratch
    """
    _gather_head_tail(span_ref, hid_ref, tid_ref, ht_s)
    # Linear(2H -> F) on the implicit concat: single K = 2*Hp contraction.
    z = (jnp.dot(ht_s[...], w1_ref[...], preferred_element_type=jnp.float32)
         + b1_ref[...])                                   # (TR, Fp) f32
    # NOTE: tanh-approximate GELU (EUP); PyTorch nn.GELU default is exact erf (~1e-3 off).
    a = jax.nn.gelu(z)
    out = (jnp.dot(a.astype(w2_ref.dtype), w2_ref[...],
                   preferred_element_type=jnp.float32) + b2_ref[...])
    o_ref[0] = out.astype(o_ref.dtype)
    # TODO(synk): dropout omitted (inference / eval mode -> identity).


def _rel_ffn_ftiled_kernel(span_ref, hid_ref, tid_ref, w1_ref, b1_ref,
                           w2_ref, b2_ref, o_ref, ht_s, acc_s):
    """Fallback when weights don't fit VMEM. Grid = (batch, rel_tiles, ffn_tiles);
    the FFN axis is the reduction axis (accumulated in f32)."""
    f = pl.program_id(2)

    @pl.when(f == 0)
    def _init():
        _gather_head_tail(span_ref, hid_ref, tid_ref, ht_s)
        acc_s[...] = jnp.zeros_like(acc_s)

    z = (jnp.dot(ht_s[...], w1_ref[...], preferred_element_type=jnp.float32)
         + b1_ref[...])                                   # (TR, TF) f32
    a = jax.nn.gelu(z)
    acc_s[...] += jnp.dot(a.astype(w2_ref.dtype), w2_ref[...],
                          preferred_element_type=jnp.float32)

    @pl.when(f == pl.num_programs(2) - 1)
    def _finalize():
        o_ref[0] = (acc_s[...] + b2_ref[...]).astype(o_ref.dtype)


@jax.jit
def rel_rep_no_context(span_reps, rel_ids, params):
    """span_reps: (B, S, H) f32; rel_ids: (B, R, 2) int -> (B, R, H) f32."""
    B, S, H = span_reps.shape
    R = rel_ids.shape[1]
    w1, b1, w2, b2 = params["w1"], params["b1"], params["w2"], params["b2"]
    F = w1.shape[1]

    # ---- padded / tiled geometry (lane-dense hidden, 8-aligned relation tiles) ----
    Hp = _round_up(H, 128)
    Fp = _round_up(F, 128)
    n_r = -(-R // _TR_MAX)
    TR = _round_up(-(-R // n_r), 8)
    # v7x megacore: keep at least 2 parallel grid steps when possible so both TCs get work.
    if B * n_r < 2 and R > 8:
        n_r = 2
        TR = _round_up(-(-R // n_r), 8)
    Rp = TR * n_r

    # ---- pad + cast (bf16 weights/activations, f32 biases; zero-pads are exact) ----
    span_p = jnp.pad(span_reps, ((0, 0), (0, 0), (0, Hp - H))).astype(_COMPUTE_DTYPE)
    hid = jnp.pad(rel_ids[..., 0].astype(jnp.int32), ((0, 0), (0, Rp - R)))[..., None]
    tid = jnp.pad(rel_ids[..., 1].astype(jnp.int32), ((0, 0), (0, Rp - R)))[..., None]
    # Fused W1: rows 0..Hp = head half (padded), rows Hp..2Hp = tail half (padded).
    w1h_p = jnp.pad(w1[:H], ((0, Hp - H), (0, Fp - F)))
    w1t_p = jnp.pad(w1[H:], ((0, Hp - H), (0, Fp - F)))
    w1_p = jnp.concatenate([w1h_p, w1t_p], axis=0).astype(_COMPUTE_DTYPE)   # (2*Hp, Fp)
    w2_p = jnp.pad(w2, ((0, Fp - F), (0, Hp - H))).astype(_COMPUTE_DTYPE)   # (Fp, Hp)
    b1_p = jnp.pad(b1, ((0, 0), (0, Fp - F))).astype(jnp.float32)
    b2_p = jnp.pad(b2, ((0, 0), (0, Hp - H))).astype(jnp.float32)

    # ---- per-chip VMEM budget & residency decision ----
    vmem_cap = _vmem_capacity_bytes()
    vmem_limit = min(vmem_cap * 7 // 8, vmem_cap - 4 * 1024 * 1024)
    weight_bytes = (2 * Hp * Fp + Fp * Hp) * 2 + (Fp + Hp) * 4
    act_bytes = (2 * S * Hp * 2            # span block (double-buffered, bf16)
                 + 2 * TR * Hp * 2         # output block (double-buffered, bf16)
                 + TR * 2 * Hp * 2         # fused head|tail scratch
                 + 2 * TR * Fp * 4)        # z / GELU f32 temporaries
    # Budget weights at 2x (default double-buffering) with headroom; otherwise F-tile.
    resident = (2 * weight_bytes + act_bytes) <= int(vmem_limit * 0.8)

    out_shape = jax.ShapeDtypeStruct((B, Rp, Hp), _OUT_DTYPE)
    gather_flops = 2 * 2 * B * Rp * S * Hp
    ffn_flops = 2 * B * Rp * (2 * Hp) * Fp + 2 * B * Rp * Fp * Hp
    common_bytes = B * S * Hp * 2 + 2 * B * Rp * 4 + B * Rp * Hp * 2

    if resident:
        cost = pl.CostEstimate(
            flops=gather_flops + ffn_flops,
            transcendentals=B * Rp * Fp,
            bytes_accessed=common_bytes + weight_bytes)      # weights streamed once
        out = pl.pallas_call(
            _rel_ffn_resident_kernel,
            out_shape=out_shape,
            grid_spec=pltpu.PrefetchScalarGridSpec(
                num_scalar_prefetch=0,
                grid=(B, n_r),
                in_specs=[
                    pl.BlockSpec((1, S, Hp), lambda b, r: (b, 0, 0)),    # span_reps
                    pl.BlockSpec((1, TR, 1), lambda b, r: (b, r, 0)),    # head ids
                    pl.BlockSpec((1, TR, 1), lambda b, r: (b, r, 0)),    # tail ids
                    pl.BlockSpec((2 * Hp, Fp), lambda b, r: (0, 0)),     # W1 (resident)
                    pl.BlockSpec((1, Fp), lambda b, r: (0, 0)),          # b1 (resident)
                    pl.BlockSpec((Fp, Hp), lambda b, r: (0, 0)),         # W2 (resident)
                    pl.BlockSpec((1, Hp), lambda b, r: (0, 0)),          # b2 (resident)
                ],
                out_specs=pl.BlockSpec((1, TR, Hp), lambda b, r: (b, r, 0)),
                scratch_shapes=[pltpu.VMEM((TR, 2 * Hp), _COMPUTE_DTYPE)]),
            compiler_params=pltpu.CompilerParams(
                dimension_semantics=("parallel", "parallel"),
                vmem_limit_bytes=vmem_limit),
            cost_estimate=cost,
        )(span_p, hid, tid, w1_p, b1_p, w2_p, b2_p)
    else:
        # F-tiled fallback: weights re-streamed per (batch, rel-tile) step.
        n_f = -(-Fp // _TF_MAX)
        TF = _round_up(-(-Fp // n_f), 128)
        Fp_new = TF * n_f
        if Fp_new != Fp:
            w1_p = jnp.pad(w1_p, ((0, 0), (0, Fp_new - Fp)))
            b1_p = jnp.pad(b1_p, ((0, 0), (0, Fp_new - Fp)))
            w2_p = jnp.pad(w2_p, ((0, Fp_new - Fp), (0, 0)))
            Fp = Fp_new
        weight_bytes = (2 * Hp * Fp + Fp * Hp) * 2 + (Fp + Hp) * 4
        cost = pl.CostEstimate(
            flops=gather_flops + 2 * B * Rp * (2 * Hp) * Fp + 2 * B * Rp * Fp * Hp,
            transcendentals=B * Rp * Fp,
            bytes_accessed=common_bytes + weight_bytes * B * n_r)   # re-streamed weights
        out = pl.pallas_call(
            _rel_ffn_ftiled_kernel,
            out_shape=out_shape,
            grid_spec=pltpu.PrefetchScalarGridSpec(
                num_scalar_prefetch=0,
                grid=(B, n_r, n_f),
                in_specs=[
                    pl.BlockSpec((1, S, Hp), lambda b, r, f: (b, 0, 0)),
                    pl.BlockSpec((1, TR, 1), lambda b, r, f: (b, r, 0)),
                    pl.BlockSpec((1, TR, 1), lambda b, r, f: (b, r, 0)),
                    pl.BlockSpec((2 * Hp, TF), lambda b, r, f: (0, f)),  # W1 F-tile
                    pl.BlockSpec((1, TF), lambda b, r, f: (0, f)),       # b1 F-tile
                    pl.BlockSpec((TF, Hp), lambda b, r, f: (f, 0)),      # W2 F-tile
                    pl.BlockSpec((1, Hp), lambda b, r, f: (0, 0)),       # b2
                ],
                out_specs=pl.BlockSpec((1, TR, Hp), lambda b, r, f: (b, r, 0)),
                scratch_shapes=[
                    pltpu.VMEM((TR, 2 * Hp), _COMPUTE_DTYPE),   # fused head|tail rows
                    pltpu.VMEM((TR, Hp), jnp.float32),          # f32 output accumulator
                ]),
            compiler_params=pltpu.CompilerParams(
                dimension_semantics=("parallel", "parallel", "arbitrary"),
                vmem_limit_bytes=vmem_limit),
            cost_estimate=cost,
        )(span_p, hid, tid, w1_p, b1_p, w2_p, b2_p)

    return out[:, :R, :H].astype(jnp.float32)


def init_params(key, hidden_size, ffn_ratio):
    """Deterministic synthetic init matching ProjectionLayer shapes (Linear(2H,F), Linear(F,H))."""
    in_dim = 2 * hidden_size
    ffn_dim = int(in_dim * ffn_ratio)
    k1, k2, k3, k4 = jax.random.split(key, 4)
    s1 = 1.0 / jnp.sqrt(jnp.float32(in_dim))
    s2 = 1.0 / jnp.sqrt(jnp.float32(ffn_dim))
    return {
        "w1": jax.random.uniform(k1, (in_dim, ffn_dim), jnp.float32, -s1, s1),   # (2H, F)
        "b1": jax.random.uniform(k2, (1, ffn_dim), jnp.float32, -s1, s1),        # (1, F)
        "w2": jax.random.uniform(k3, (ffn_dim, hidden_size), jnp.float32, -s2, s2),  # (F, H)
        "b2": jax.random.uniform(k4, (1, hidden_size), jnp.float32, -s2, s2),    # (1, H)
    }


def reference(span_reps, rel_ids, params):
    """Pure-JAX f32 reference of the same forward pass."""
    head = jnp.take_along_axis(span_reps, rel_ids[..., 0:1], axis=1)
    tail = jnp.take_along_axis(span_reps, rel_ids[..., 1:2], axis=1)
    cat = jnp.concatenate([head, tail], axis=-1)
    z = jax.nn.gelu(cat @ params["w1"] + params["b1"][0])
    return z @ params["w2"] + params["b2"][0]


if __name__ == "__main__":
    batch = 2
    num_spans = 8
    hidden = 32
    ffn_ratio = 4.0
    num_rel = num_spans * num_spans   # all head-tail pairs -> 64 relations

    key = jax.random.PRNGKey(0)
    k_span, k_param = jax.random.split(key)

    span_reps = jax.random.normal(k_span, (batch, num_spans, hidden), jnp.float32)
    hh, tt = jnp.meshgrid(jnp.arange(num_spans), jnp.arange(num_spans), indexing="ij")
    rel_ids = jnp.broadcast_to(
        jnp.stack([hh.reshape(-1), tt.reshape(-1)], axis=-1)[None],
        (batch, num_rel, 2)).astype(jnp.int32)

    params = init_params(k_param, hidden, ffn_ratio)

    out = rel_rep_no_context(span_reps, rel_ids, params)
    out = jax.block_until_ready(out)

    ref = reference(span_reps, rel_ids, params)
    assert out.shape == (batch, num_rel, hidden)
    # bf16 compute/writeback with f32 accumulation vs f32 reference -> loose tolerance.
    assert jnp.allclose(out, ref, atol=2e-2, rtol=2e-2)

    print("KERNEL_OK")
</pallas_src>

<mosaic_0001>
module attributes {stable_mosaic.version = 11 : i64} {
  func.func @_rel_ffn_resident_kernel(%arg0: i32, %arg1: i32, %arg2: memref<1x8x128xbf16, #tpu.memory_space<vmem>>, %arg3: memref<1x64x1xi32, #tpu.memory_space<vmem>>, %arg4: memref<1x64x1xi32, #tpu.memory_space<vmem>>, %arg5: memref<256x256xbf16, #tpu.memory_space<vmem>>, %arg6: memref<1x256xf32, #tpu.memory_space<vmem>>, %arg7: memref<256x128xbf16, #tpu.memory_space<vmem>>, %arg8: memref<1x128xf32, #tpu.memory_space<vmem>>, %arg9: memref<1x64x128xbf16, #tpu.memory_space<vmem>>, %arg10: memref<64x256xbf16, #tpu.memory_space<vmem>>) attributes {dimension_semantics = [#tpu.dimension_semantics<parallel>, #tpu.dimension_semantics<parallel>], iteration_bounds = array<i64: 2, 1>, scalar_prefetch = 0 : i64, scratch_operands = 1 : i64, tpu.core_type = #tpu.core_type<tc>, window_params = [{transform_indices = @transform_0, window_bounds = array<i64: 1, 8, 128>}, {transform_indices = @transform_1, window_bounds = array<i64: 1, 64, 1>}, {transform_indices = @transform_2, window_bounds = array<i64: 1, 64, 1>}, {pipeline_mode = #tpu.pipeline_mode<synchronous>, transform_indices = @transform_3, window_bounds = array<i64: 256, 256>}, {pipeline_mode = #tpu.pipeline_mode<synchronous>, transform_indices = @transform_4, window_bounds = array<i64: 1, 256>}, {pipeline_mode = #tpu.pipeline_mode<synchronous>, transform_indices = @transform_5, window_bounds = array<i64: 256, 128>}, {pipeline_mode = #tpu.pipeline_mode<synchronous>, transform_indices = @transform_6, window_bounds = array<i64: 1, 128>}, {transform_indices = @transform_7, window_bounds = array<i64: 1, 64, 128>}]} {
    %c0 = arith.constant 0 : index
    %c0_0 = arith.constant 0 : index
    %c0_1 = arith.constant 0 : index
    %0 = vector.load %arg2[%c0, %c0_0, %c0_1] : memref<1x8x128xbf16, #tpu.memory_space<vmem>>, vector<1x8x128xbf16>
    %1 = vector.shape_cast %0 : vector<1x8x128xbf16> to vector<8x128xbf16>
    %2 = tpu.iota {dimensions = array<i32: 1>} : vector<64x8xi32>
    %c0_2 = arith.constant 0 : index
    %c0_3 = arith.constant 0 : index
    %c0_4 = arith.constant 0 : index
    %3 = vector.load %arg3[%c0_2, %c0_3, %c0_4] : memref<1x64x1xi32, #tpu.memory_space<vmem>>, vector<1x64x1xi32>
    %4 = vector.shape_cast %3 : vector<1x64x1xi32> to vector<64x1xi32>
    %5 = vector.broadcast %4 : vector<64x1xi32> to vector<64x8xi32>
    %6 = arith.cmpi eq, %5, %2 : vector<64x8xi32>
    %7 = arith.extui %6 : vector<64x8xi1> to vector<64x8xi32>
    %8 = arith.sitofp %7 : vector<64x8xi32> to vector<64x8xf32>
    %9 = arith.truncf %8 : vector<64x8xf32> to vector<64x8xbf16>
    %c0_5 = arith.constant 0 : index
    %c0_6 = arith.constant 0 : index
    %c0_7 = arith.constant 0 : index
    %10 = vector.load %arg4[%c0_5, %c0_6, %c0_7] : memref<1x64x1xi32, #tpu.memory_space<vmem>>, vector<1x64x1xi32>
    %11 = vector.shape_cast %10 : vector<1x64x1xi32> to vector<64x1xi32>
    %12 = vector.broadcast %11 : vector<64x1xi32> to vector<64x8xi32>
    %13 = arith.cmpi eq, %12, %2 : vector<64x8xi32>
    %14 = arith.extui %13 : vector<64x8xi1> to vector<64x8xi32>
    %15 = arith.sitofp %14 : vector<64x8xi32> to vector<64x8xf32>
    %16 = arith.truncf %15 : vector<64x8xf32> to vector<64x8xbf16>
    %cst = arith.constant dense<0.000000e+00> : vector<64x128xf32>
    %17 = tpu.matmul %9, %1, %cst {dimension_numbers = #tpu.dot_dimension_numbers<[1], [0], [0], [1], [0, 0, 1, 1], [], []>} : vector<64x8xbf16>, vector<8x128xbf16>, vector<64x128xf32> -> vector<64x128xf32>
    %18 = arith.truncf %17 : vector<64x128xf32> to vector<64x128xbf16>
    %c0_8 = arith.constant 0 : index
    %c0_9 = arith.constant 0 : index
    %19 = vector.load %arg10[%c0_8, %c0_9] : memref<64x256xbf16, #tpu.memory_space<vmem>>, vector<64x128xbf16>
    tpu.vector_store %arg10[%c0_8, %c0_9], %18 {strides = array<i32>} : memref<64x256xbf16, #tpu.memory_space<vmem>>, vector<64x128xbf16>,
    %cst_10 = arith.constant dense<0.000000e+00> : vector<64x128xf32>
    %20 = tpu.matmul %16, %1, %cst_10 {dimension_numbers = #tpu.dot_dimension_numbers<[1], [0], [0], [1], [0, 0, 1, 1], [], []>} : vector<64x8xbf16>, vector<8x128xbf16>, vector<64x128xf32> -> vector<64x128xf32>
    %21 = arith.truncf %20 : vector<64x128xf32> to vector<64x128xbf16>
    %c0_11 = arith.constant 0 : index
    %c128 = arith.constant 128 : index
    %22 = vector.load %arg10[%c0_11, %c128] : memref<64x256xbf16, #tpu.memory_space<vmem>>, vector<64x128xbf16>
    tpu.vector_store %arg10[%c0_11, %c128], %21 {strides = array<i32>} : memref<64x256xbf16, #tpu.memory_space<vmem>>, vector<64x128xbf16>,
    %c0_12 = arith.constant 0 : index
    %c0_13 = arith.constant 0 : index
    %23 = vector.load %arg10[%c0_12, %c0_13] : memref<64x256xbf16, #tpu.memory_space<vmem>>, vector<64x256xbf16>
    %c0_14 = arith.constant 0 : index
    %c0_15 = arith.constant 0 : index
    %24 = vector.load %arg5[%c0_14, %c0_15] : memref<256x256xbf16, #tpu.memory_space<vmem>>, vector<256x256xbf16>
    %cst_16 = arith.constant dense<0.000000e+00> : vector<64x256xf32>
    %25 = tpu.matmul %23, %24, %cst_16 {dimension_numbers = #tpu.dot_dimension_numbers<[1], [0], [0], [1], [0, 0, 1, 1], [], []>} : vector<64x256xbf16>, vector<256x256xbf16>, vector<64x256xf32> -> vector<64x256xf32>
    %c0_17 = arith.constant 0 : index
    %c0_18 = arith.constant 0 : index
    %26 = vector.load %arg6[%c0_17, %c0_18] : memref<1x256xf32, #tpu.memory_space<vmem>>, vector<1x256xf32>
    %27 = vector.broadcast %26 : vector<1x256xf32> to vector<64x256xf32>
    %28 = arith.addf %25, %27 : vector<64x256xf32>
    %29 = arith.mulf %28, %28 : vector<64x256xf32>
    %30 = arith.mulf %28, %29 : vector<64x256xf32>
    %cst_19 = arith.constant 4.471500e-02 : f32
    %31 = vector.broadcast %cst_19 : f32 to vector<64x256xf32>
    %32 = arith.mulf %31, %30 : vector<64x256xf32>
    %33 = arith.addf %28, %32 : vector<64x256xf32>
    %cst_20 = arith.constant 0.797884583 : f32
    %34 = vector.broadcast %cst_20 : f32 to vector<64x256xf32>
    %35 = arith.mulf %34, %33 : vector<64x256xf32>
    %36 = math.tanh %35 : vector<64x256xf32>
    %cst_21 = arith.constant 1.000000e+00 : f32
    %37 = vector.broadcast %cst_21 : f32 to vector<64x256xf32>
    %38 = arith.addf %37, %36 : vector<64x256xf32>
    %cst_22 = arith.constant 5.000000e-01 : f32
    %39 = vector.broadcast %cst_22 : f32 to vector<64x256xf32>
    %40 = arith.mulf %39, %38 : vector<64x256xf32>
    %41 = arith.mulf %28, %40 : vector<64x256xf32>
    %42 = arith.truncf %41 : vector<64x256xf32> to vector<64x256xbf16>
    %c0_23 = arith.constant 0 : index
    %c0_24 = arith.constant 0 : index
    %43 = vector.load %arg7[%c0_23, %c0_24] : memref<256x128xbf16, #tpu.memory_space<vmem>>, vector<256x128xbf16>
    %cst_25 = arith.constant dense<0.000000e+00> : vector<64x128xf32>
    %44 = tpu.matmul %42, %43, %cst_25 {dimension_numbers = #tpu.dot_dimension_numbers<[1], [0], [0], [1], [0, 0, 1, 1], [], []>} : vector<64x256xbf16>, vector<256x128xbf16>, vector<64x128xf32> -> vector<64x128xf32>
    %c0_26 = arith.constant 0 : index
    %c0_27 = arith.constant 0 : index
    %45 = vector.load %arg8[%c0_26, %c0_27] : memref<1x128xf32, #tpu.memory_space<vmem>>, vector<1x128xf32>
    %46 = vector.broadcast %45 : vector<1x128xf32> to vector<64x128xf32>
    %47 = arith.addf %44, %46 : vector<64x128xf32>
    %48 = arith.truncf %47 : vector<64x128xf32> to vector<64x128xbf16>
    %c0_28 = arith.constant 0 : index
    %c0_29 = arith.constant 0 : index
    %c0_30 = arith.constant 0 : index
    %49 = vector.load %arg9[%c0_28, %c0_29, %c0_30] : memref<1x64x128xbf16, #tpu.memory_space<vmem>>, vector<1x64x128xbf16>
    %50 = vector.shape_cast %49 : vector<1x64x128xbf16> to vector<64x128xbf16>
    %51 = vector.shape_cast %48 : vector<64x128xbf16> to vector<1x64x128xbf16>
    tpu.vector_store %arg9[%c0_28, %c0_29, %c0_30], %51 {strides = array<i32>} : memref<1x64x128xbf16, #tpu.memory_space<vmem>>, vector<1x64x128xbf16>,
    return
  }
  func.func @transform_0(%arg0: i32, %arg1: i32) -> (i32, i32, i32) {
    %c0_i32 = arith.constant 0 : i32
    %c0_i32_0 = arith.constant 0 : i32
    %c0_i32_1 = arith.constant 0 : i32
    return %arg0, %c0_i32, %c0_i32_0 : i32, i32, i32
  }
  func.func @transform_1(%arg0: i32, %arg1: i32) -> (i32, i32, i32) {
    %c0_i32 = arith.constant 0 : i32
    %c0_i32_0 = arith.constant 0 : i32
    return %arg0, %arg1, %c0_i32 : i32, i32, i32
  }
  func.func @transform_2(%arg0: i32, %arg1: i32) -> (i32, i32, i32) {
    %c0_i32 = arith.constant 0 : i32
    %c0_i32_0 = arith.constant 0 : i32
    return %arg0, %arg1, %c0_i32 : i32, i32, i32
  }
  func.func @transform_3(%arg0: i32, %arg1: i32) -> (i32, i32) {
    %c0_i32 = arith.constant 0 : i32
    %c0_i32_0 = arith.constant 0 : i32
    %c0_i32_1 = arith.constant 0 : i32
    return %c0_i32, %c0_i32_0 : i32, i32
  }
  func.func @transform_4(%arg0: i32, %arg1: i32) -> (i32, i32) {
    %c0_i32 = arith.constant 0 : i32
    %c0_i32_0 = arith.constant 0 : i32
    %c0_i32_1 = arith.constant 0 : i32
    return %c0_i32, %c0_i32_0 : i32, i32
  }
  func.func @transform_5(%arg0: i32, %arg1: i32) -> (i32, i32) {
    %c0_i32 = arith.constant 0 : i32
    %c0_i32_0 = arith.constant 0 : i32
    %c0_i32_1 = arith.constant 0 : i32
    return %c0_i32, %c0_i32_0 : i32, i32
  }
  func.func @transform_6(%arg0: i32, %arg1: i32) -> (i32, i32) {
    %c0_i32 = arith.constant 0 : i32
    %c0_i32_0 = arith.constant 0 : i32
    %c0_i32_1 = arith.constant 0 : i32
    return %c0_i32, %c0_i32_0 : i32, i32
  }
  func.func @transform_7(%arg0: i32, %arg1: i32) -> (i32, i32, i32) {
    %c0_i32 = arith.constant 0 : i32
    %c0_i32_0 = arith.constant 0 : i32
    return %arg0, %arg1, %c0_i32 : i32, i32, i32
  }
}

</mosaic_0001>

<bundles_post_ra>
// kernel: rel_rep_no_context.1
= control target key start
LH: loop header
LB: loop body
LE: loop exit
PB: predicated region body
PF: predicated region fallthrough
CT: control target
= control target key end

     0   :  { %s1855_s24 = smov 0   ;;  %s1857_s25 = smov 0   ;;  %s2219_s0 = inlined_call_operand.vmem [shape: bf16[2,8,128], index: 0, kind: input, shape index: {}]   ;;  %s2220_s1 = inlined_call_operand.vmem [shape: s32[2,64,1], index: 1, kind: input, shape index: {}]   ;;  %s2221_s2 = inlined_call_operand.vmem [shape: s32[2,64,1], index: 2, kind: input, shape index: {}]   ;;  %s2222_s3 = inlined_call_operand.vmem [shape: bf16[256,256], index: 3, kind: input, shape index: {}]   ;;  %s2223_s4 = inlined_call_operand.vmem [shape: f32[1,256], index: 4, kind: input, shape index: {}]   ;;  %s2224_s5 = inlined_call_operand.vmem [shape: bf16[256,128], index: 5, kind: input, shape index: {}]   ;;  %s2225_s6 = inlined_call_operand.vmem [shape: f32[1,128], index: 6, kind: input, shape index: {}]   ;;  %s2226_s7 = inlined_call_operand.vmem [shape: bf16[2,64,128], index: 7, kind: output, shape index: {}]  }
   0x1   :  { %s1859_s26 = smov 0  }
   0x2 LB: > { %s29_s27 = sadd.s32 1, %s1807_s25  ;;  %p1468_p0 = scmp.ge.s32.totalorder %s1811_s26, 1  ;;  %s1811_s26 = sphi %s1859_s26, %s17_s26   ;;  %s1807_s25 = sphi %s1857_s25, %s2228_s25   ;;  %s1803_s24 = sphi %s1855_s24, %s2227_s24  }
   0x3   : > { %p31_p1 = scmp.ge.s32.totalorder %s29_s27, 2  ;;  %p284_p2 = scmp.lt.s32.totalorder %s1811_s26, 3 }
   0x5   : > { %s2230_s27 = smov (%p31_p1, %s29_s27), 0  ;;  %p285_p3 = pnand %p1468_p0, %p284_p2 }
   0x6   : > { %p337_p4 = scmp.lt.s32.totalorder (!%p285_p3), %s1803_s24, 1  ;;  %v1813_v0 = vmov (!%p285_p3), 0   ;;  %vm508_vm0 = vcmask (!%p285_p3), 1043456   ;;  %v1693_v19 = vld [vmem:[%s2222_s3 + $0x4] ss:$8 sps:$4 sm:$0xff] (!%p285_p3)   ;;  %v373_v40 = vlaneseq (!%p285_p3)  ;;  %vm495_vm5 = vcmask (!%p285_p3), 64512  }
   0x7   : > { %288 = sbr.rel (%p285_p3) target bundleno = 887 (0x377), region = 48  ;;  %1692 = vset.pattern.permute.xlu1 (!%p285_p3), %v1813_v0  ;;  %1691 = vset.pattern.permute.xlu0 (!%p285_p3), %v1813_v0  ;;  %v1695_v20 = vld [vmem:[%s2222_s3] ss:$8 sps:$4 sm:$0xff] (!%p285_p3)   ;;  %v1696_v21 = vld [vmem:[%s2222_s3 + $0x14] ss:$8 sps:$4 sm:$0xff] (!%p285_p3)   ;;  %v1814_v46 = vmov (!%p285_p3), 0.0  }
   0x8   : > { %882 = vmatprep.subr.bf16.mxu0 (!%p285_p3), %v1693_v19  ;;  %v1698_v22 = vld [vmem:[%s2222_s3 + $0x10] ss:$8 sps:$4 sm:$0xff] (!%p285_p3)   ;;  %v1699_v23 = vld [vmem:[%s2222_s3 + $0x24] ss:$8 sps:$4 sm:$0xff] (!%p285_p3)   ;;  %v1701_v24 = vld [vmem:[%s2222_s3 + $0x20] ss:$8 sps:$4 sm:$0xff] (!%p285_p3)  }
   0x9   : > { %883 = vmatpush1.bf16.msra.mxu0 (!%p285_p3), %v1695_v20  ;;  %v1702_v25 = vld [vmem:[%s2222_s3 + $0x34] ss:$8 sps:$4 sm:$0xff] (!%p285_p3)   ;;  %v1704_v26 = vld [vmem:[%s2222_s3 + $0x30] ss:$8 sps:$4 sm:$0xff] (!%p285_p3)   ;;  %v1705_v27 = vld [vmem:[%s2222_s3 + $0x44] ss:$8 sps:$4 sm:$0xff] (!%p285_p3)  }
   0xa   : > { %884 = vmatprep.subr.bf16.mxu0 (!%p285_p3), %v1696_v21  ;;  %v1707_v28 = vld [vmem:[%s2222_s3 + $0x40] ss:$8 sps:$4 sm:$0xff] (!%p285_p3)   ;;  %v1708_v29 = vld [vmem:[%s2222_s3 + $0x54] ss:$8 sps:$4 sm:$0xff] (!%p285_p3)   ;;  %v1710_v30 = vld [vmem:[%s2222_s3 + $0x50] ss:$8 sps:$4 sm:$0xff] (!%p285_p3)  }
   0xb   : > { %v1711_v31 = vld [vmem:[%s2222_s3 + $0x64] ss:$8 sps:$4 sm:$0xff] (!%p285_p3)   ;;  %v1713_v32 = vld [vmem:[%s2222_s3 + $0x60] ss:$8 sps:$4 sm:$0xff] (!%p285_p3)   ;;  %v1714_v33 = vld [vmem:[%s2222_s3 + $0x74] ss:$8 sps:$4 sm:$0xff] (!%p285_p3)  }
   0xc   : > { %v1716_v34 = vld [vmem:[%s2222_s3 + $0x70] ss:$8 sps:$4 sm:$0xff] (!%p285_p3)   ;;  %v1717_v35 = vld [vmem:[%s2222_s3 + $0x84] ss:$8 sps:$4 sm:$0xff] (!%p285_p3)   ;;  %v1719_v36 = vld [vmem:[%s2222_s3 + $0x80] ss:$8 sps:$4 sm:$0xff] (!%p285_p3)  }
   0xd   : > { %885 = vmatpush1.bf16.msra.mxu0 (!%p285_p3), %v1698_v22  ;;  %v1720_v37 = vld [vmem:[%s2222_s3 + $0x94] ss:$8 sps:$4 sm:$0xff] (!%p285_p3)   ;;  %v1722_v38 = vld [vmem:[%s2222_s3 + $0x90] ss:$8 sps:$4 sm:$0xff] (!%p285_p3)   ;;  %v1723_v39 = vld [vmem:[%s2222_s3 + $0xa4] ss:$8 sps:$4 sm:$0xff] (!%p285_p3)  }
   0xe   : > { %s2232_s24 = smov (!%p337_p4, %s1803_s24), 1  ;;  %886 = vmatprep.subr.bf16.mxu0 %v1699_v23  ;;  %v1953_v41 = vand.u32 127, %v373_v40  ;;  %v1725_v19 = vld [vmem:[%s2222_s3 + $0xa0] ss:$8 sps:$4 sm:$0xff]   ;;  %v1726_v20 = vld [vmem:[%s2222_s3 + $0xb4] ss:$8 sps:$4 sm:$0xff]  }
   0xf   : > { %s1559_s28 = sshll.u32 %s2232_s24, 6  ;;  %s1469_s9 = sshll.u32 %s2232_s24, 2  ;;  %v1728_v21 = vld [vmem:[%s2222_s3 + $0xb0] ss:$8 sps:$4 sm:$0xff]   ;;  %v1729_v22 = vld [vmem:[%s2222_s3 + $0xc4] ss:$8 sps:$4 sm:$0xff]  }
  0x10   : > { %s349_s8 = scalar_lea.vmem %s2220_s1, %s1559_s28  ;;  %s340_s12 = scalar_lea.vmem %s2219_s0, %s1469_s9  ;;  %v1731_v23 = vld [vmem:[%s2222_s3 + $0xc0] ss:$8 sps:$4 sm:$0xff]  }
  0x11   : > { %v377_v1 = vld [vmem:[%s349_s8 + $0x10] sm:$0xff]  ;;  %v375_v2 = vld [vmem:[%s349_s8] sm:$0xff]  ;;  %v378_v3 = vld [vmem:[%s349_s8 + $0x18] sm:$0xff]  ;;  %s359_s15 = scalar_lea.vmem %s2221_s2, %s1559_s28  ;;  %887 = vmatpush1.bf16.msra.mxu0 %v1701_v24  ;;  %s1561_s21 = sshll.u32 %s2232_s24, 5 }
  0x12   : > { %390 = vperm.xlu1 %1692, %v377_v1   ;;  %384 = vperm.xlu0 %1691, %v375_v2   ;;  %v376_v4 = vld [vmem:[%s349_s8 + $0x8] sm:$0xff]  ;;  %v379_v6 = vld [vmem:[%s349_s8 + $0x20] sm:$0xff]  ;;  %v382_v9 = vld [vmem:[%s349_s8 + $0x38] sm:$0xff]  ;;  %s2204_s28 = scalar_lea.vmem %s2226_s7, %s1561_s21 }
  0x13   : > { %v380_v5 = vld [vmem:[%s349_s8 + $0x28] sm:$0xff]  ;;  %v372_v7 = vld [vmem:[%s340_s12] sm:$0xf]  ;;  %v381_v10 = vld [vmem:[%s349_s8 + $0x30] sm:$0xff]  ;;  %888 = vmatprep.subr.bf16.mxu0 %v1702_v25 }
  0x14   : > { %1663 = vmatprep.subr.msk.bf16.mxu1 %vm508_vm0, %v372_v7  ;;  %v1883_v8 = vsel %vm508_vm0, %v372_v7, 0  ;;  %v436_v11 = vld [vmem:[%s359_s15 + $0x8] sm:$0xff]  ;;  %v435_v12 = vld [vmem:[%s359_s15] sm:$0xff]  ;;  %v438_v13 = vld [vmem:[%s359_s15 + $0x18] sm:$0xff] }
  0x15   : > { %1644 = vmatpush3.bf16.msra.mxu1 %v1883_v8  ;;  %v437_v14 = vld [vmem:[%s359_s15 + $0x10] sm:$0xff]  ;;  %v440_v15 = vld [vmem:[%s359_s15 + $0x28] sm:$0xff]  ;;  %v439_v16 = vld [vmem:[%s359_s15 + $0x20] sm:$0xff]  ;;  %889 = vmatpush1.bf16.msra.mxu0 %v1704_v26 }
  0x16   : > { %393 = vperm.xlu1 %1692, %v378_v3   ;;  %387 = vperm.xlu0 %1691, %v376_v4   ;;  %v442_v17 = vld [vmem:[%s359_s15 + $0x38] sm:$0xff]  ;;  %v441_v18 = vld [vmem:[%s359_s15 + $0x30] sm:$0xff]  ;;  %v1735_v26 = vld [vmem:[%s2222_s3 + $0xe4] ss:$8 sps:$4 sm:$0xff]  }
  0x17   : > { %1664 = vmatprep.subr.msk.bf16.mxu1 %vm508_vm0, %v372_v7  ;;  %890 = vmatprep.subr.bf16.mxu0 %v1705_v27  ;;  %v1732_v24 = vld [vmem:[%s2222_s3 + $0xd4] ss:$8 sps:$4 sm:$0xff]   ;;  %v1734_v25 = vld [vmem:[%s2222_s3 + $0xd0] ss:$8 sps:$4 sm:$0xff]   ;;  %v1737_v27 = vld [vmem:[%s2222_s3 + $0xe0] ss:$8 sps:$4 sm:$0xff]  }
  0x19   : > { %891 = vmatpush1.bf16.msra.mxu0 %v1707_v28  ;;  %v1738_v28 = vld [vmem:[%s2222_s3 + $0xf4] ss:$8 sps:$4 sm:$0xff]  }
  0x1a   : > { %399 = vperm.xlu1 %1692, %v380_v5   ;;  %396 = vperm.xlu0 %1691, %v379_v6  }
  0x1b   : > { %892 = vmatprep.subr.bf16.mxu0 %v1708_v29  ;;  %v1740_v29 = vld [vmem:[%s2222_s3 + $0xf0] ss:$8 sps:$4 sm:$0xff]  }
  0x1d   : > { %893 = vmatpush1.bf16.msra.mxu0 %v1710_v30 }
  0x1e   : > { %405 = vperm.xlu1 %1692, %v382_v9   ;;  %402 = vperm.xlu0 %1691, %v381_v10  }
  0x1f   : > { %894 = vmatprep.subr.bf16.mxu0 %v1711_v31 }
  0x21   : > { %895 = vmatpush1.bf16.msra.mxu0 %v1713_v32 }
  0x22   : > { %447 = vperm.xlu1 %1692, %v436_v11   ;;  %444 = vperm.xlu0 %1691, %v435_v12  }
  0x23   : > { %896 = vmatprep.subr.bf16.mxu0 %v1714_v33 }
  0x25   : > { %897 = vmatpush1.bf16.msra.mxu0 %v1716_v34 }
  0x26   : > { %453 = vperm.xlu1 %1692, %v438_v13   ;;  %450 = vperm.xlu0 %1691, %v437_v14  }
  0x27   : > { %898 = vmatprep.subr.bf16.mxu0 %v1717_v35 }
  0x29   : > { %899 = vmatpush1.bf16.msra.mxu0 %v1719_v36 }
  0x2a   : > { %459 = vperm.xlu1 %1692, %v440_v15   ;;  %456 = vperm.xlu0 %1691, %v439_v16  }
  0x2b   : > { %900 = vmatprep.subr.bf16.mxu0 %v1720_v37 }
  0x2d   : > { %901 = vmatpush1.bf16.msra.mxu0 %v1722_v38 }
  0x2e   : > { %465 = vperm.xlu1 %1692, %v442_v17   ;;  %462 = vperm.xlu0 %1691, %v441_v18  }
  0x2f   : > { %902 = vmatprep.subr.bf16.mxu0 %v1723_v39 }
  0x31   : > { %903 = vmatpush1.bf16.msra.mxu0 %v1725_v19 }
  0x32   : > { %904 = vmatprep.subr.bf16.mxu0 %v1726_v20 }
  0x35   : > { %905 = vmatpush1.bf16.msra.mxu0 %v1728_v21 }
  0x36   : > { %906 = vmatprep.subr.bf16.mxu0 %v1729_v22 }
  0x39   : > { %907 = vmatpush1.bf16.msra.mxu0 %v1731_v23 }
  0x3a   : > { %908 = vmatprep.subr.bf16.mxu0 %v1732_v24 }
  0x3d   : > { %909 = vmatpush1.bf16.msra.mxu0 %v1734_v25 }
  0x3e   : > { %910 = vmatprep.subr.bf16.mxu0 %v1735_v26 }
  0x41   : > { %911 = vmatpush1.bf16.msra.mxu0 %v1737_v27 }
  0x42   : > { %912 = vmatprep.subr.bf16.mxu0 %v1738_v28 }
  0x45   : > { %913 = vmatpush1.bf16.msra.mxu0 %v1740_v29 }
  0x91   : > { %v391_v42 = vpop.permute.xlu1 %390  ;;  %v385_v43 = vpop.permute.xlu0 %384 }
  0x92   : > { %vm409_vm1 = vcmp.eq.s32.totalorder %v391_v42, %v1953_v41  ;;  %vm407_vm2 = vcmp.eq.s32.totalorder %v385_v43, %v1953_v41 }
  0x93   : > { %v1478_v47 = vsel %vm409_vm1, 1.0, %v1814_v46  ;;  %v1476_v48 = vsel %vm407_vm2, 1.0, %v1814_v46 }
  0x95   : > { %v394_v44 = vpop.permute.xlu1 %393  ;;  %v388_v45 = vpop.permute.xlu0 %387 }
  0x96   : > { %vm410_vm3 = vcmp.eq.s32.totalorder %v394_v44, %v1953_v41  ;;  %vm408_vm4 = vcmp.eq.s32.totalorder %v388_v45, %v1953_v41 }
  0x97   : > { %v1479_v49 = vsel %vm410_vm3, 1.0, %v1814_v46  ;;  %v1477_v50 = vsel %vm408_vm4, 1.0, %v1814_v46 }
  0x98   : > { %v432_v51 = vpack.c.bf16 %v1479_v49, %v1478_v47  ;;  %v431_v52 = vpack.c.bf16 %v1477_v50, %v1476_v48 }
  0x99   : > { %v400_v53 = vpop.permute.xlu1 %399  ;;  %v397_v54 = vpop.permute.xlu0 %396 }
  0x9a   : > { %vm412_vm6 = vcmp.eq.s32.totalorder %v400_v53, %v1953_v41  ;;  %vm411_vm7 = vcmp.eq.s32.totalorder %v397_v54, %v1953_v41  ;;  %1645 = vmatprep.mubr.msk.bf16.mxu1 %vm495_vm5, %v431_v52 }
  0x9b   : > { %v1481_v55 = vsel %vm412_vm6, 1.0, %v1814_v46  ;;  %v1480_v56 = vsel %vm411_vm7, 1.0, %v1814_v46  ;;  %1646 = vmatmul.mubr.msk.bf16.vlgmr.msra.gmra.mrb[0].mxu1 %vm495_vm5, %v432_v51 }
  0x9c   : > { %v433_v57 = vpack.c.bf16 %v1481_v55, %v1480_v56  ;;  %1654 = vmatpush3.bf16.msra.mxu1 %v1883_v8  ;;  %v1741_v55 = vld [vmem:[%s2224_s5 + $0x40] sm:$0xff]  }
  0x9d   : > { %v406_v58 = vpop.permute.xlu1 %405  ;;  %v403_v59 = vpop.permute.xlu0 %402  ;;  %v1742_v56 = vld [vmem:[%s2224_s5] sm:$0xff]   ;;  %1603 = vmatprep.subr.bf16.mxu1 %v1741_v55 }
  0x9e   : > { %vm414_vm8 = vcmp.eq.s32.totalorder %v406_v58, %v1953_v41  ;;  %vm413_vm9 = vcmp.eq.s32.totalorder %v403_v59, %v1953_v41  ;;  %1649 = vmatprep.mubr.msk.bf16.mxu1 %vm495_vm5, %v433_v57  ;;  %v1743_v57 = vld [vmem:[%s2224_s5 + $0x48] sm:$0xff]   ;;  %v1745_v59 = vld [vmem:[%s2224_s5 + $0x50] sm:$0xff]  }
  0x9f   : > { %v1483_v60 = vsel %vm414_vm8, 1.0, %v1814_v46  ;;  %v1482_v61 = vsel %vm413_vm9, 1.0, %v1814_v46  ;;  %v1744_v58 = vld [vmem:[%s2224_s5 + $0x8] sm:$0xff]  }
  0xa0   : > { %v434_v62 = vpack.c.bf16 %v1483_v60, %v1482_v61  ;;  %v1746_v60 = vld [vmem:[%s2224_s5 + $0x10] sm:$0xff]   ;;  %v1747_v61 = vld [vmem:[%s2224_s5 + $0x58] sm:$0xff]  }
  0xa1   : > { %v448_v63 = vpop.permute.xlu1 %447  ;;  %v445_v0 = vpop.permute.xlu0 %444 }
  0xa2   : > { %vm468_vm10 = vcmp.eq.s32.totalorder %v448_v63, %v1953_v41  ;;  %vm467_vm11 = vcmp.eq.s32.totalorder %v445_v0, %v1953_v41  ;;  %v1749_v63 = vld [vmem:[%s2224_s5 + $0x60] sm:$0xff]  }
  0xa3   : > { %v1485_v1 = vsel %vm468_vm10, 1.0, %v1814_v46  ;;  %v1484_v2 = vsel %vm467_vm11, 1.0, %v1814_v46  ;;  %1650 = vmatmul.mubr.msk.bf16.gmra.mrb[4].mxu1 %vm495_vm5, %v434_v62  ;;  %v1748_v62 = vld [vmem:[%s2224_s5 + $0x18] sm:$0xff]   ;;  %v1750_v0 = vld [vmem:[%s2224_s5 + $0x20] sm:$0xff]  }
  0xa4   : > { %v491_v3 = vpack.c.bf16 %v1485_v1, %v1484_v2  ;;  %v1751_v1 = vld [vmem:[%s2224_s5 + $0x68] sm:$0xff]  }
  0xa5   : > { %v454_v4 = vpop.permute.xlu1 %453  ;;  %v451_v5 = vpop.permute.xlu0 %450  ;;  %v1752_v2 = vld [vmem:[%s2224_s5 + $0x28] sm:$0xff]  }
  0xa6   : > { %vm470_vm12 = vcmp.eq.s32.totalorder %v454_v4, %v1953_v41  ;;  %vm469_vm13 = vcmp.eq.s32.totalorder %v451_v5, %v1953_v41  ;;  %1655 = vmatprep.mubr.msk.bf16.mxu1 %vm495_vm5, %v491_v3  ;;  %v1753_v3 = vld [vmem:[%s2224_s5 + $0x70] sm:$0xff]   ;;  %v1755_v5 = vld [vmem:[%s2224_s5 + $0x78] sm:$0xff]  }
  0xa7   : > { %v1487_v6 = vsel %vm470_vm12, 1.0, %v1814_v46  ;;  %v1486_v7 = vsel %vm469_vm13, 1.0, %v1814_v46  ;;  %v1754_v4 = vld [vmem:[%s2224_s5 + $0x30] sm:$0xff]  }
  0xa8   : > { %v492_v8 = vpack.c.bf16 %v1487_v6, %v1486_v7  ;;  %v1756_v6 = vld [vmem:[%s2224_s5 + $0x38] sm:$0xff]   ;;  %v713_v7 = vshrl.u32 %v373_v40, 7 }
  0xa9   : > { %v460_v9 = vpop.permute.xlu1 %459  ;;  %v457_v10 = vpop.permute.xlu0 %456 }
  0xaa   : > { %vm472_vm14 = vcmp.eq.s32.totalorder %v460_v9, %v1953_v41  ;;  %vm471_vm15 = vcmp.eq.s32.totalorder %v457_v10, %v1953_v41  ;;  %v710_v9 = vld [vmem:[%s2223_s4] sm:$0x3]  ;;  %v718_v10 = vsub.s32 1, %v713_v7 }
  0xab   : > { %v1489_v11 = vsel %vm472_vm14, 1.0, %v1814_v46  ;;  %v1488_v12 = vsel %vm471_vm15, 1.0, %v1814_v46  ;;  %1656 = vmatmul.mubr.msk.bf16.vlgmr.msra.gmra.mrb[8].mxu1 %vm495_vm5, %v492_v8  ;;  %v714_v8 = vsub.s32 0, %v713_v7 }
  0xac   : > { %v493_v13 = vpack.c.bf16 %v1489_v11, %v1488_v12  ;;  %1604 = vmatpush3.bf16.msra.mxu1 %v1742_v56  ;;  %v2067_v12 = vrot.slane %v710_v9, %v718_v10 }
  0xad   : > { %v466_v14 = vpop.permute.xlu1 %465  ;;  %v463_v15 = vpop.permute.xlu0 %462  ;;  %1605 = vmatprep.subr.bf16.mxu1 %v1743_v57  ;;  %v2065_v11 = vrot.slane %v710_v9, %v714_v8 }
  0xae   : > { %vm474_vm0 = vcmp.eq.s32.totalorder %v466_v14, %v1953_v41  ;;  %vm473_vm1 = vcmp.eq.s32.totalorder %v463_v15, %v1953_v41  ;;  %1659 = vmatprep.mubr.msk.bf16.mxu1 %vm495_vm5, %v493_v13 }
  0xaf   : > { %v1491_v16 = vsel %vm474_vm0, 1.0, %v1814_v46  ;;  %v1490_v17 = vsel %vm473_vm1, 1.0, %v1814_v46 }
  0xb0   : > { %v494_v18 = vpack.c.bf16 %v1491_v16, %v1490_v17  ;;  %1606 = vmatpush3.bf16.msra.mxu1 %v1744_v58 }
  0xb1   : > { %1607 = vmatprep.subr.bf16.mxu1 %v1745_v59 }
  0xb3   : > { %1660 = vmatmul.mubr.msk.bf16.gmra.mrb[12].mxu1 %vm495_vm5, %v494_v18 }
  0xb4   : > { %1608 = vmatpush3.bf16.msra.mxu1 %v1746_v60 }
  0xb5   : > { %1609 = vmatprep.subr.bf16.mxu1 %v1747_v61 }
  0xb8   : > { %1610 = vmatpush3.bf16.msra.mxu1 %v1748_v62 }
  0xb9   : > { %1611 = vmatprep.subr.bf16.mxu1 %v1749_v63 }
  0xbc   : > { %1612 = vmatpush3.bf16.msra.mxu1 %v1750_v0 }
  0xbd   : > { %1613 = vmatprep.subr.bf16.mxu1 %v1751_v1 }
  0xc0   : > { %1614 = vmatpush3.bf16.msra.mxu1 %v1752_v2 }
  0xc1   : > { %1615 = vmatprep.subr.bf16.mxu1 %v1753_v3 }
  0xc4   : > { %1616 = vmatpush3.bf16.msra.mxu1 %v1754_v4 }
  0xc5   : > { %1617 = vmatprep.subr.bf16.mxu1 %v1755_v5 }
  0xc8   : > { %1618 = vmatpush3.bf16.msra.mxu1 %v1756_v6 }
 0x16e   : > { %v1647_v30 = vpop.f32.mrb[0].mxu1 }
 0x16f   : > { %v546_v31 = vpop.f32.mrb[1].mxu1 }
 0x170   : > { %v1648_v32 = vpop.f32.mrb[2].mxu1 }
 0x171   : > { %v578_v33 = vpack.c.bf16 %v1648_v32, %v1647_v30  ;;  %v549_v34 = vpop.f32.mrb[3].mxu1 }
 0x172   : > { %v577_v35 = vpack.c.bf16 %v549_v34, %v546_v31 }
 0x176   : > { %v1651_v36 = vpop.f32.mrb[4].mxu1 }
 0x177   : > { %v562_v37 = vpop.f32.mrb[5].mxu1 }
 0x178   : > { %v1652_v38 = vpop.f32.mrb[6].mxu1 }
 0x179   : > { %v580_v39 = vpack.c.bf16 %v1652_v38, %v1651_v36  ;;  %v565_v41 = vpop.f32.mrb[7].mxu1 }
 0x17a   : > { %v579_v42 = vpack.c.bf16 %v565_v41, %v562_v37 }
 0x17e   : > { %v1657_v43 = vpop.f32.mrb[8].mxu1 }
 0x17f   : > { %v631_v44 = vpop.f32.mrb[9].mxu1 }
 0x180   : > { %v1658_v45 = vpop.f32.mrb[10].mxu1 }
 0x181   : > { %v663_v46 = vpack.c.bf16 %v1658_v45, %v1657_v43  ;;  %v634_v47 = vpop.f32.mrb[11].mxu1 }
 0x182   : > { %v662_v48 = vpack.c.bf16 %v634_v47, %v631_v44 }
 0x184   : > { %914 = vmatprep.mubr.bf16.mxu0 %v662_v48 }
 0x185   : > { %915 = vmatmul.mubr.bf16.vlgmr.msra.gmra.mrb[0].mxu0 %v577_v35 }
 0x186   : > { %v1661_v49 = vpop.f32.mrb[12].mxu1  ;;  %924 = vmatprep.mubr.bf16.mxu0 %v663_v46 }
 0x187   : > { %v647_v50 = vpop.f32.mrb[13].mxu1 }
 0x188   : > { %v1662_v51 = vpop.f32.mrb[14].mxu1 }
 0x189   : > { %v665_v52 = vpack.c.bf16 %v1662_v51, %v1661_v49  ;;  %v650_v53 = vpop.f32.mrb[15].mxu1 }
 0x18a   : > { %v664_v54 = vpack.c.bf16 %v650_v53, %v647_v50 }
 0x18d   : > { %925 = vmatmul.mubr.bf16.gmra.mrb[4].mxu0 %v578_v33 }
 0x18e   : > { %934 = vmatprep.mubr.bf16.mxu0 %v664_v54 }
 0x195   : > { %935 = vmatmul.mubr.bf16.gmra.mrb[8].mxu0 %v579_v42 }
 0x196   : > { %944 = vmatprep.mubr.bf16.mxu0 %v665_v52 }
 0x19d   : > { %945 = vmatmul.mubr.bf16.gmra.mrb[12].mxu0 %v580_v39 }
 0x258   : > { %v916_v13 = vpop.f32.mrb[0].mxu0 }
 0x259   : > { %v2070_v14 = vadd.f32 %v916_v13, %v2065_v11  ;;  %v918_v15 = vpop.f32.mrb[1].mxu0 }
 0x25a   : > { %v2073_v16 = vadd.f32 %v918_v15, %v2067_v12  ;;  %v920_v17 = vpop.f32.mrb[2].mxu0 }
 0x25b   : > { %v955_v40 = vmul.f32 %v2070_v14, %v2070_v14  ;;  %v2078_v18 = vadd.f32 %v920_v17, %v2065_v11  ;;  %v922_v19 = vpop.f32.mrb[3].mxu0 }
 0x25c   : > { %v956_v20 = vmul.f32 %v2073_v16, %v2073_v16  ;;  %v2083_v21 = vadd.f32 %v922_v19, %v2067_v12 }
 0x25d   : > { %v971_v22 = vmul.f32 %v955_v40, %v2070_v14  ;;  %v957_v23 = vmul.f32 %v2078_v18, %v2078_v18 }
 0x25e   : > { %v972_v24 = vmul.f32 %v956_v20, %v2073_v16  ;;  %v958_v25 = vmul.f32 %v2083_v21, %v2083_v21 }
 0x25f   : > { %v987_v26 = vmul.f32 0.044715, %v971_v22  ;;  %v973_v27 = vmul.f32 %v957_v23, %v2078_v18 }
 0x260   : > { %v988_v28 = vmul.f32 0.044715, %v972_v24  ;;  %v974_v29 = vmul.f32 %v958_v25, %v2083_v21  ;;  %v926_v30 = vpop.f32.mrb[4].mxu0 }
 0x261   : > { %v1003_v31 = vadd.f32 %v987_v26, %v2070_v14  ;;  %v989_v32 = vmul.f32 0.044715, %v973_v27  ;;  %v2095_v33 = vadd.f32 %v926_v30, %v2065_v11  ;;  %v928_v34 = vpop.f32.mrb[5].mxu0 }
 0x262   : > { %v1004_v35 = vadd.f32 %v988_v28, %v2073_v16  ;;  %v990_v36 = vmul.f32 0.044715, %v974_v29  ;;  %v2099_v37 = vadd.f32 %v928_v34, %v2067_v12  ;;  %v930_v38 = vpop.f32.mrb[6].mxu0 }
 0x263   : > { %v1019_v39 = vmul.f32 0.7978846, %v1003_v31  ;;  %v1005_v41 = vadd.f32 %v989_v32, %v2078_v18  ;;  %v959_v42 = vmul.f32 %v2095_v33, %v2095_v33  ;;  %v2105_v43 = vadd.f32 %v930_v38, %v2065_v11  ;;  %v932_v44 = vpop.f32.mrb[7].mxu0 }
 0x264   : > { %v1020_v45 = vmul.f32 0.7978846, %v1004_v35  ;;  %v1006_v46 = vadd.f32 %v990_v36, %v2083_v21  ;;  %v960_v47 = vmul.f32 %v2099_v37, %v2099_v37  ;;  %v2111_v48 = vadd.f32 %v932_v44, %v2067_v12 }
 0x265   : > { %1757 = vtanh.f32 %v1019_v39  ;;  %v1021_v49 = vmul.f32 0.7978846, %v1005_v41  ;;  %v975_v50 = vmul.f32 %v959_v42, %v2095_v33  ;;  %v961_v51 = vmul.f32 %v2105_v43, %v2105_v43 }
 0x266   : > { %1759 = vtanh.f32 %v1020_v45  ;;  %v1022_v52 = vmul.f32 0.7978846, %v1006_v46  ;;  %v976_v53 = vmul.f32 %v960_v47, %v2099_v37  ;;  %v962_v54 = vmul.f32 %v2111_v48, %v2111_v48 }
 0x267   : > { %1761 = vtanh.f32 %v1021_v49  ;;  %v991_v55 = vmul.f32 0.044715, %v975_v50  ;;  %v977_v56 = vmul.f32 %v961_v51, %v2105_v43 }
 0x268   : > { %v992_v57 = vmul.f32 0.044715, %v976_v53  ;;  %v978_v58 = vmul.f32 %v962_v54, %v2111_v48  ;;  %v936_v59 = vpop.f32.mrb[8].mxu0  ;;  %1763 = vtanh.f32 %v1022_v52 }
 0x269   : > { %v1007_v60 = vadd.f32 %v991_v55, %v2095_v33  ;;  %v993_v61 = vmul.f32 0.044715, %v977_v56  ;;  %v2123_v62 = vadd.f32 %v936_v59, %v2065_v11  ;;  %v938_v63 = vpop.f32.mrb[9].mxu0 }
 0x26a   : > { %v1008_v0 = vadd.f32 %v992_v57, %v2099_v37  ;;  %v994_v1 = vmul.f32 0.044715, %v978_v58  ;;  %v2127_v2 = vadd.f32 %v938_v63, %v2067_v12  ;;  %v940_v3 = vpop.f32.mrb[10].mxu0 }
 0x26b   : > { %v1023_v4 = vmul.f32 0.7978846, %v1007_v60  ;;  %v1009_v5 = vadd.f32 %v993_v61, %v2105_v43  ;;  %v963_v6 = vmul.f32 %v2123_v62, %v2123_v62  ;;  %v2133_v7 = vadd.f32 %v940_v3, %v2065_v11  ;;  %v942_v8 = vpop.f32.mrb[11].mxu0 }
 0x26c   : > { %v1024_v9 = vmul.f32 0.7978846, %v1008_v0  ;;  %v1010_v10 = vadd.f32 %v994_v1, %v2111_v48  ;;  %v964_v13 = vmul.f32 %v2127_v2, %v2127_v2  ;;  %v2139_v15 = vadd.f32 %v942_v8, %v2067_v12 }
 0x26d   : > { %1765 = vtanh.f32 %v1023_v4  ;;  %v1025_v17 = vmul.f32 0.7978846, %v1009_v5  ;;  %v979_v40 = vmul.f32 %v963_v6, %v2123_v62  ;;  %v965_v19 = vmul.f32 %v2133_v7, %v2133_v7 }
 0x26e   : > { %1767 = vtanh.f32 %v1024_v9  ;;  %v1026_v20 = vmul.f32 0.7978846, %v1010_v10  ;;  %v980_v22 = vmul.f32 %v964_v13, %v2127_v2  ;;  %v966_v23 = vmul.f32 %v2139_v15, %v2139_v15 }
 0x26f   : > { %v1758_v24 = vpop.eup %1757  ;;  %1769 = vtanh.f32 %v1025_v17  ;;  %v995_v25 = vmul.f32 0.044715, %v979_v40  ;;  %v981_v26 = vmul.f32 %v965_v19, %v2133_v7 }
 0x270   : > { %v1760_v27 = vpop.eup %1759  ;;  %v1051_v28 = vadd.f32 1.0, %v1758_v24  ;;  %1771 = vtanh.f32 %v1026_v20  ;;  %v996_v29 = vmul.f32 0.044715, %v980_v22  ;;  %v982_v30 = vmul.f32 %v966_v23, %v2139_v15  ;;  %v946_v31 = vpop.f32.mrb[12].mxu0 }
 0x271   : > { %v1762_v32 = vpop.eup %1761  ;;  %v1011_v34 = vadd.f32 %v995_v25, %v2123_v62  ;;  %v997_v35 = vmul.f32 0.044715, %v981_v26  ;;  %v2151_v36 = vadd.f32 %v946_v31, %v2065_v11  ;;  %v948_v38 = vpop.f32.mrb[13].mxu0  ;;  %v1052_v39 = vadd.f32 1.0, %v1760_v27 }
 0x272   : > { %v1067_v41 = vmul.f32 0.5, %v1051_v28  ;;  %v1053_v42 = vadd.f32 1.0, %v1762_v32  ;;  %v1012_v44 = vadd.f32 %v996_v29, %v2127_v2  ;;  %v998_v45 = vmul.f32 0.044715, %v982_v30  ;;  %v950_v46 = vpop.f32.mrb[14].mxu0  ;;  %v1764_v53 = vpop.eup %1763 }
 0x273   : > { %v1027_v47 = vmul.f32 0.7978846, %v1011_v34  ;;  %v1013_v49 = vadd.f32 %v997_v35, %v2133_v7  ;;  %v967_v50 = vmul.f32 %v2151_v36, %v2151_v36  ;;  %v2158_v51 = vadd.f32 %v948_v38, %v2067_v12  ;;  %v952_v52 = vpop.f32.mrb[15].mxu0 }
 0x274   : > { %v1083_v54 = vmul.f32 %v1067_v41, %v2070_v14  ;;  %v1069_v55 = vmul.f32 0.5, %v1053_v42  ;;  %v1028_v56 = vmul.f32 0.7978846, %v1012_v44  ;;  %v1014_v57 = vadd.f32 %v998_v45, %v2139_v15 }
 0x275   : > { %1773 = vtanh.f32 %v1027_v47  ;;  %v1029_v58 = vmul.f32 0.7978846, %v1013_v49  ;;  %v983_v59 = vmul.f32 %v967_v50, %v2151_v36  ;;  %v968_v60 = vmul.f32 %v2158_v51, %v2158_v51 }
 0x276   : > { %v1085_v61 = vmul.f32 %v1069_v55, %v2078_v18  ;;  %1775 = vtanh.f32 %v1028_v56  ;;  %v1030_v63 = vmul.f32 0.7978846, %v1014_v57  ;;  %v2167_v0 = vadd.f32 %v950_v46, %v2065_v11 }
 0x277   : > { %v1766_v1 = vpop.eup %1765  ;;  %1777 = vtanh.f32 %v1029_v58  ;;  %v999_v14 = vmul.f32 0.044715, %v983_v59  ;;  %v984_v3 = vmul.f32 %v968_v60, %v2158_v51  ;;  %v2171_v4 = vadd.f32 %v952_v52, %v2067_v12 }
 0x278   : > { %v1768_v5 = vpop.eup %1767  ;;  %v1099_v6 = vpack.c.bf16 %v1085_v61, %v1083_v54  ;;  %1779 = vtanh.f32 %v1030_v63  ;;  %v969_v8 = vmul.f32 %v2167_v0, %v2167_v0  ;;  %v1054_v18 = vadd.f32 1.0, %v1764_v53 }
 0x279   : > { %v1770_v9 = vpop.eup %1769  ;;  %v1015_v10 = vadd.f32 %v999_v14, %v2151_v36  ;;  %v1000_v11 = vmul.f32 0.044715, %v984_v3  ;;  %v970_v13 = vmul.f32 %v2171_v4, %v2171_v4  ;;  %v1068_v17 = vmul.f32 0.5, %v1052_v39 }
 0x27a   : > { %v1772_v40 = vpop.eup %1771  ;;  %v985_v19 = vmul.f32 %v969_v8, %v2167_v0  ;;  %v1070_v12 = vmul.f32 0.5, %v1054_v18  ;;  %v1056_v20 = vadd.f32 1.0, %v1768_v5  ;;  %v1055_v22 = vadd.f32 1.0, %v1766_v1 }
 0x27b   : > { %v1031_v23 = vmul.f32 0.7978846, %v1015_v10  ;;  %v1016_v24 = vadd.f32 %v1000_v11, %v2158_v51  ;;  %v986_v25 = vmul.f32 %v970_v13, %v2171_v4  ;;  %v1084_v26 = vmul.f32 %v1068_v17, %v2073_v16 }
 0x27c   : > { %v1001_v27 = vmul.f32 0.044715, %v985_v19  ;;  %v1086_v28 = vmul.f32 %v1070_v12, %v2083_v21  ;;  %v1058_v29 = vadd.f32 1.0, %v1772_v40  ;;  %v1072_v30 = vmul.f32 0.5, %v1056_v20 }
 0x27d   : > { %1781 = vtanh.f32 %v1031_v23  ;;  %v1032_v31 = vmul.f32 0.7978846, %v1016_v24  ;;  %v1002_v32 = vmul.f32 0.044715, %v986_v25  ;;  %v1057_v34 = vadd.f32 1.0, %v1770_v9 }
 0x27e   : > { %v1017_v35 = vadd.f32 %v1001_v27, %v2167_v0  ;;  %v1100_v38 = vpack.c.bf16 %v1086_v28, %v1084_v26  ;;  %v1074_v39 = vmul.f32 0.5, %v1058_v29  ;;  %v1071_v44 = vmul.f32 0.5, %v1055_v22  ;;  %v1532_v28 = vld [vmem:[%s2225_s6] ss:$0 sm:$0xff] }
 0x27f   : > { %v1774_v41 = vpop.eup %1773  ;;  %1783 = vtanh.f32 %v1032_v31  ;;  %v1018_v42 = vadd.f32 %v1002_v32, %v2171_v4  ;;  %v1073_v45 = vmul.f32 0.5, %v1057_v34  ;;  %v1088_v21 = vmul.f32 %v1072_v30, %v2099_v37 }
 0x280   : > { %v1776_v16 = vpop.eup %1775  ;;  %v1033_v46 = vmul.f32 0.7978846, %v1017_v35  ;;  %1274 = vmatprep.mubr.bf16.mxu1 %v1100_v38  ;;  %v1090_v47 = vmul.f32 %v1074_v39, %v2111_v48  ;;  %v1059_v49 = vadd.f32 1.0, %v1774_v41  ;;  %v1087_v53 = vmul.f32 %v1071_v44, %v2095_v33 }
 0x281   : > { %v1778_v50 = vpop.eup %1777  ;;  %v1034_v52 = vmul.f32 0.7978846, %v1018_v42  ;;  %1275 = vmatmul.mubr.bf16.vlgmr.msra.gmra.mrb[16].mxu1 %v1099_v6  ;;  %v1089_v54 = vmul.f32 %v1073_v45, %v2105_v43  ;;  %v1060_v55 = vadd.f32 1.0, %v1776_v16 }
 0x282   : > { %v1780_v56 = vpop.eup %1779  ;;  %1785 = vtanh.f32 %v1033_v46  ;;  %v1102_v57 = vpack.c.bf16 %v1090_v47, %v1088_v21  ;;  %v1061_v58 = vadd.f32 1.0, %v1778_v50  ;;  %v1075_v59 = vmul.f32 0.5, %v1059_v49 }
 0x283   : > { %1787 = vtanh.f32 %v1034_v52  ;;  %v1101_v60 = vpack.c.bf16 %v1089_v54, %v1087_v53  ;;  %v1062_v61 = vadd.f32 1.0, %v1780_v56  ;;  %v1076_v37 = vmul.f32 0.5, %v1060_v55 }
 0x284   : > { %1282 = vmatprep.mubr.bf16.mxu1 %v1102_v57  ;;  %v1077_v48 = vmul.f32 0.5, %v1061_v58  ;;  %v1091_v1 = vmul.f32 %v1075_v59, %v2123_v62 }
 0x285   : > { %v1078_v63 = vmul.f32 0.5, %v1062_v61  ;;  %v1092_v43 = vmul.f32 %v1076_v37, %v2127_v2 }
 0x286   : > { %v1093_v14 = vmul.f32 %v1077_v48, %v2133_v7 }
 0x287   : > { %v1782_v33 = vpop.eup %1781  ;;  %v1094_v3 = vmul.f32 %v1078_v63, %v2139_v15 }
 0x288   : > { %v1103_v5 = vpack.c.bf16 %v1093_v14, %v1091_v1  ;;  %v1063_v18 = vadd.f32 1.0, %v1782_v33 }
 0x289   : > { %v1784_v6 = vpop.eup %1783  ;;  %1283 = vmatmul.mubr.bf16.gmra.mrb[20].mxu1 %v1101_v60  ;;  %v1104_v8 = vpack.c.bf16 %v1094_v3, %v1092_v43 }
 0x28a   : > { %v1064_v9 = vadd.f32 1.0, %v1784_v6  ;;  %v1079_v17 = vmul.f32 0.5, %v1063_v18 }
 0x28b   : > { %1290 = vmatprep.mubr.bf16.mxu1 %v1104_v8 }
 0x28c   : > { %v1786_v10 = vpop.eup %1785  ;;  %v1080_v62 = vmul.f32 0.5, %v1064_v9  ;;  %v1095_v2 = vmul.f32 %v1079_v17, %v2151_v36 }
 0x28d   : > { %v1788_v11 = vpop.eup %1787  ;;  %v1065_v13 = vadd.f32 1.0, %v1786_v10 }
 0x28e   : > { %v1066_v40 = vadd.f32 1.0, %v1788_v11  ;;  %v1096_v12 = vmul.f32 %v1080_v62, %v2158_v51 }
 0x28f   : > { %v1081_v19 = vmul.f32 0.5, %v1065_v13 }
 0x290   : > { %v1082_v7 = vmul.f32 0.5, %v1066_v40 }
 0x291   : > { %1291 = vmatmul.mubr.bf16.gmra.mrb[24].mxu1 %v1103_v5  ;;  %v1097_v15 = vmul.f32 %v1081_v19, %v2167_v0 }
 0x292   : > { %v1098_v20 = vmul.f32 %v1082_v7, %v2171_v4 }
 0x293   : > { %v1105_v22 = vpack.c.bf16 %v1097_v15, %v1095_v2 }
 0x294   : > { %v1106_v23 = vpack.c.bf16 %v1098_v20, %v1096_v12 }
 0x296   : > { %1298 = vmatprep.mubr.bf16.mxu1 %v1106_v23 }
 0x299   : > { %1299 = vmatmul.mubr.bf16.gmra.mrb[28].mxu1 %v1105_v22 }
 0x354   : > { %v1619_v24 = vpop.f32.mrb[16].mxu1 }
 0x355   : > { %v1620_v25 = vpop.f32.mrb[17].mxu1 }
 0x356   : > { %v1621_v26 = vadd.f32 %v1620_v25, %v1619_v24  ;;  %v1622_v27 = vpop.f32.mrb[18].mxu1 }
 0x357   : > { %v1623_v29 = vpop.f32.mrb[19].mxu1 }
 0x358   : > { %v1624_v36 = vadd.f32 %v1623_v29, %v1622_v27  ;;  %v1277_v0 = vadd.f32 %v1621_v26, %v1532_v28 }
 0x35a   : > { %v1280_v30 = vadd.f32 %v1624_v36, %v1532_v28 }
 0x35c   : > { %v1573_v51 = vpack.c.bf16 %v1280_v30, %v1277_v0  ;;  %v1625_v4 = vpop.f32.mrb[20].mxu1 }
 0x35d   : > { %v1626_v31 = vpop.f32.mrb[21].mxu1 }
 0x35e   : > { %1574 = vst [vmem:[%s2204_s28] sm:$0xff] %v1573_v51   ;;  %v1627_v32 = vadd.f32 %v1626_v31, %v1625_v4  ;;  %v1628_v34 = vpop.f32.mrb[22].mxu1 }
 0x35f   : > { %v1629_v35 = vpop.f32.mrb[23].mxu1 }
 0x360   : > { %v1630_v38 = vadd.f32 %v1629_v35, %v1628_v34  ;;  %v1285_v39 = vadd.f32 %v1627_v32, %v1532_v28 }
 0x362   : > { %v1288_v41 = vadd.f32 %v1630_v38, %v1532_v28 }
 0x364   : > { %v1578_v42 = vpack.c.bf16 %v1288_v41, %v1285_v39  ;;  %v1631_v44 = vpop.f32.mrb[24].mxu1 }
 0x365   : > { %v1632_v45 = vpop.f32.mrb[25].mxu1 }
 0x366   : > { %1590 = vst [vmem:[%s2204_s28 + $0x8] sm:$0xff] %v1578_v42   ;;  %v1633_v16 = vadd.f32 %v1632_v45, %v1631_v44  ;;  %v1634_v46 = vpop.f32.mrb[26].mxu1 }
 0x367   : > { %v1635_v21 = vpop.f32.mrb[27].mxu1 }
 0x368   : > { %v1636_v47 = vadd.f32 %v1635_v21, %v1634_v46  ;;  %v1293_v49 = vadd.f32 %v1633_v16, %v1532_v28 }
 0x36a   : > { %v1296_v50 = vadd.f32 %v1636_v47, %v1532_v28 }
 0x36c   : > { %v1583_v52 = vpack.c.bf16 %v1296_v50, %v1293_v49  ;;  %v1637_v53 = vpop.f32.mrb[28].mxu1 }
 0x36d   : > { %v1638_v54 = vpop.f32.mrb[29].mxu1 }
 0x36e   : > { %1591 = vst [vmem:[%s2204_s28 + $0x10] sm:$0xff] %v1583_v52   ;;  %v1639_v55 = vadd.f32 %v1638_v54, %v1637_v53  ;;  %v1640_v56 = vpop.f32.mrb[30].mxu1 }
 0x36f   : > { %v1641_v57 = vpop.f32.mrb[31].mxu1 }
 0x370   : > { %v1642_v58 = vadd.f32 %v1641_v57, %v1640_v56  ;;  %v1301_v59 = vadd.f32 %v1639_v55, %v1532_v28 }
 0x372   : > { %v1304_v60 = vadd.f32 %v1642_v58, %v1532_v28 }
 0x374   : > { %v1588_v61 = vpack.c.bf16 %v1304_v60, %v1301_v59 }
 0x376   : > { %1592 = vst [vmem:[%s2204_s28 + $0x18] sm:$0xff] %v1588_v61  }
 0x377 PF: > { %s17_s26 = sadd.s32 1, %s1811_s26   ;;  %s2227_s24 = smov %s1807_s25 }
 0x378   : > { %p14_p5 = scmp.ge.s32.totalorder %s17_s26, 4   ;;  %s2228_s25 = smov %s2230_s27 }
 0x37a   :  { %16 = sbr.rel (!%p14_p5) target bundleno = 2 (0x2), region = 84 }

</bundles_post_ra>
